<compile_context>
chip_gen: v6e
topology: v6e:2x2x1
jax: 0.10.0
libtpu: 0.0.40
codegen_flags: <defaults>
</compile_context>

<pallas_src>
import jax
import jax.numpy as jnp
from jax.experimental import pallas as pl
from jax.experimental.pallas import tpu as pltpu


def _poly3_kernel(coef_ref, x_ref, o_ref):
    # coef_ref: SMEM (4,) f32 -> a, b, c, d
    a = coef_ref[0]
    b = coef_ref[1]
    c = coef_ref[2]
    d = coef_ref[3]
    x = x_ref[...].astype(jnp.float32)
    # Horner form: a + x*(b + x*(c + x*d)) -- fewest VPU ops, accumulate in f32.
    y = a + x * (b + x * (c + x * d))
    o_ref[...] = y.astype(o_ref.dtype)


def polynomial3(x, a, b, c, d, *, lane_width=512, target_tile_bytes=4 * 1024 * 1024):
    """Apply y = a + b*x + c*x^2 + d*x^3 elementwise via a Pallas TPU kernel.

    Works for any input shape/dtype: flattens to a lane-dense (Mp, lane_width) slab,
    pads only to the dtype sublane multiple, runs the tiled kernel, reshapes back.
    """
    orig_shape = x.shape
    in_dtype = x.dtype
    # Match torch promotion: float params applied to an integer tensor -> float32 output.
    out_dtype = in_dtype if jnp.issubdtype(in_dtype, jnp.floating) else jnp.float32
    n = int(x.size)

    N = lane_width  # multiple of 128 -> unmasked, lane-dense vld/vst
    in_item = jnp.dtype(in_dtype).itemsize
    out_item = jnp.dtype(out_dtype).itemsize
    # Native row packing per vreg: 8 rows (4B), 16 rows (2B), 32 rows (1B). Use the
    # strictest of input/output so both sides keep fully packed sublane stores.
    sublane = max(8, 32 // min(in_item, out_item))

    # Rows at lane width N, padded only to the sublane packing multiple (NOT to tm).
    m_rows = -(-n // N)
    Mp = -(-m_rows // sublane) * sublane
    total = Mp * N

    # Tile height: byte-budgeted and sublane-aligned (no fixed row cap -> narrow dtypes
    # still get ~target_tile_bytes per block).
    tm_cap = (target_tile_bytes // (N * max(in_item, out_item))) // sublane * sublane
    tm_cap = max(sublane, tm_cap)
    if Mp > sublane:
        # Ensure at least two grid steps so v7x's 2 TensorCores both get work.
        half = -(-Mp // 2)
        tm = min(tm_cap, -(-half // sublane) * sublane)
    else:
        tm = Mp
    grid_m = -(-Mp // tm)  # partial last block handled by Pallas (OOB writes dropped)

    xf = x.reshape(-1)
    if total != n:
        # Tiny pad (< sublane rows of elements); allow_input_fusion lets XLA fuse it into
        # the kernel's input instead of materializing a padded HBM copy.
        xf = jnp.pad(xf, (0, total - n))
    x2d = xf.reshape(Mp, N)

    # Coefficients stay f32 regardless of input dtype.
    coef = jnp.stack(
        [jnp.asarray(a), jnp.asarray(b), jnp.asarray(c), jnp.asarray(d)]
    ).astype(jnp.float32)

    # VMEM budget: double-buffered input + double-buffered output (+ headroom),
    # capped well under v7x's 64 MiB physical VMEM.
    vmem_limit = min(2 * tm * N * in_item + 2 * tm * N * out_item + (8 << 20), 48 << 20)

    out2d = pl.pallas_call(
        _poly3_kernel,
        out_shape=jax.ShapeDtypeStruct((Mp, N), out_dtype),
        grid=(grid_m,),
        in_specs=[
            pl.BlockSpec(memory_space=pltpu.MemorySpace.SMEM),  # coefficients (scalars)
            pl.BlockSpec((tm, N), lambda i: (i, 0)),            # x slab
        ],
        out_specs=pl.BlockSpec((tm, N), lambda i: (i, 0)),
        compiler_params=pltpu.CompilerParams(
            dimension_semantics=("parallel",),  # independent tiles -> shard across TCs (v7x)
            vmem_limit_bytes=int(vmem_limit),
            allow_input_fusion=[False, True],   # fuse the (tiny) pad/reshape into the input
        ),
    )(coef, x2d)

    out_flat = out2d.reshape(-1)
    if total != n:
        out_flat = out_flat[:n]
    return out_flat.reshape(orig_shape)


if __name__ == "__main__":
    key = jax.random.PRNGKey(0)
    k_a, k_b, k_c, k_d, k_x, k_x2 = jax.random.split(key, 6)

    # Deterministic "parameters" (mimicking torch.randn(()) init).
    a = jax.random.normal(k_a, ())
    b = jax.random.normal(k_b, ())
    c = jax.random.normal(k_c, ())
    d = jax.random.normal(k_d, ())

    # Small input consistent with the module (elementwise -> any shape works).
    x = jax.random.normal(k_x, (2, 4, 16, 16), dtype=jnp.float32)

    y = polynomial3(x, a, b, c, d)
    y = jax.block_until_ready(y)

    y_ref = a + b * x + c * x**2 + d * x**3
    assert jnp.allclose(y, y_ref, atol=1e-5, rtol=1e-5), "mismatch vs reference"

    # Ragged size (not a multiple of the lane width) to exercise the pad/trim path.
    x2 = jax.random.normal(k_x2, (3, 1000), dtype=jnp.float32)
    y2 = jax.block_until_ready(polynomial3(x2, a, b, c, d))
    y2_ref = a + b * x2 + c * x2**2 + d * x2**3
    assert jnp.allclose(y2, y2_ref, atol=1e-5, rtol=1e-5), "mismatch vs reference (ragged)"

    print("KERNEL_OK")
</pallas_src>

<mosaic_0001>
module attributes {stable_mosaic.version = 11 : i64} {
  func.func @_poly3_kernel(%arg0: i32, %arg1: memref<4xf32, #tpu.memory_space<smem>>, %arg2: memref<8x512xf32, #tpu.memory_space<vmem>>, %arg3: memref<8x512xf32, #tpu.memory_space<vmem>>) attributes {dimension_semantics = [#tpu.dimension_semantics<parallel>], iteration_bounds = array<i64: 1>, scalar_prefetch = 0 : i64, scratch_operands = 0 : i64, tpu.core_type = #tpu.core_type<tc>, window_params = [{transform_indices = @transform_0, window_bounds = array<i64: 4>}, {transform_indices = @transform_1, window_bounds = array<i64: 8, 512>}, {transform_indices = @transform_2, window_bounds = array<i64: 8, 512>}]} {
    %c0 = arith.constant 0 : index
    %0 = memref.load %arg1[%c0] : memref<4xf32, #tpu.memory_space<smem>>
    %c1 = arith.constant 1 : index
    %1 = memref.load %arg1[%c1] : memref<4xf32, #tpu.memory_space<smem>>
    %c2 = arith.constant 2 : index
    %2 = memref.load %arg1[%c2] : memref<4xf32, #tpu.memory_space<smem>>
    %c3 = arith.constant 3 : index
    %3 = memref.load %arg1[%c3] : memref<4xf32, #tpu.memory_space<smem>>
    %c0_0 = arith.constant 0 : index
    %c0_1 = arith.constant 0 : index
    %4 = vector.load %arg2[%c0_0, %c0_1] : memref<8x512xf32, #tpu.memory_space<vmem>>, vector<8x512xf32>
    %5 = vector.broadcast %3 : f32 to vector<8x512xf32>
    %6 = arith.mulf %4, %5 : vector<8x512xf32>
    %7 = vector.broadcast %2 : f32 to vector<8x512xf32>
    %8 = arith.addf %7, %6 : vector<8x512xf32>
    %9 = arith.mulf %4, %8 : vector<8x512xf32>
    %10 = vector.broadcast %1 : f32 to vector<8x512xf32>
    %11 = arith.addf %10, %9 : vector<8x512xf32>
    %12 = arith.mulf %4, %11 : vector<8x512xf32>
    %13 = vector.broadcast %0 : f32 to vector<8x512xf32>
    %14 = arith.addf %13, %12 : vector<8x512xf32>
    %c0_2 = arith.constant 0 : index
    %c0_3 = arith.constant 0 : index
    %15 = vector.load %arg3[%c0_2, %c0_3] : memref<8x512xf32, #tpu.memory_space<vmem>>, vector<8x512xf32>
    tpu.vector_store %arg3[%c0_2, %c0_3], %14 {strides = array<i32>} : memref<8x512xf32, #tpu.memory_space<vmem>>, vector<8x512xf32>,
    return
  }
  func.func @transform_0(%arg0: i32) -> i32 {
    %c0_i32 = arith.constant 0 : i32
    %c0_i32_0 = arith.constant 0 : i32
    return %c0_i32 : i32
  }
  func.func @transform_1(%arg0: i32) -> (i32, i32) {
    %c0_i32 = arith.constant 0 : i32
    %c0_i32_0 = arith.constant 0 : i32
    return %arg0, %c0_i32 : i32, i32
  }
  func.func @transform_2(%arg0: i32) -> (i32, i32) {
    %c0_i32 = arith.constant 0 : i32
    %c0_i32_0 = arith.constant 0 : i32
    return %arg0, %c0_i32 : i32, i32
  }
}

</mosaic_0001>

<bundles_post_ra>
// kernel: tpu_custom_call.1
= control target key start
LH: loop header
LB: loop body
LE: loop exit
PB: predicated region body
PF: predicated region fallthrough
CT: control target
= control target key end

     0   :  { %7 = vsyncpa [#allocation5], 0  ;;  %s178_s0 = inlined_call_operand.hbm [shape: f32[4], index: 0, kind: input, shape index: {}]   ;;  %s179_s1 = inlined_call_operand.hbm [shape: f32[8,512], index: 1, kind: input, shape index: {}]   ;;  %s180_s2 = inlined_call_operand.hbm [shape: f32[8,512], index: 2, kind: output, shape index: {}]  }
   0x1   :  { %8 = vsyncpa [#allocation3], 0 }
   0x2   :  { %9 = vsyncpa [#allocation4], 0  ;;  %s151_s9 = smov [#allocation2]   ;;  %s152_s12 = smov [#allocation6]  }
   0x3   :  { %17 = dma.hbm_to_smem %s178_s0, 16, %s151_s9, [#allocation5]  }
   0x4   :  { %s24_s13 = sshll.u32 %s152_s12, 4  ;;  %s25_s13 = int_to_ptr.vmem [resolvable:$true] %s24_s13 }
   0x5   :  { %s113_s14 = scalar_lea.vmem %s25_s13, 512  ;;  %p118_p1 = scmp.lt.s32.totalorder %s25_s13, %s25_s13 }
   0x6   :  { %p114_p0 = scmp.ne.s32.totalorder %s25_s13, %s113_s14  ;;  %p119_p2 = scmp.lt.s32.totalorder %s113_s14, %s113_s14 }
   0x8   :  { %p120_p3 = por %p119_p2, %p118_p1 }
   0xa   :  { %p121_p4 = pnand %p120_p3, %p114_p0 }
   0xc   :  { %124 = shalt.err (!%p121_p4)
}
   0xd   :  { %27 = dma.hbm_to_vmem [thread:$0]  %s179_s1, 512, %s25_s13, [#allocation3]  }
   0xe   :  { %145 = dma.done.wait [#allocation5], 16  }
   0xf   :  { %146 = vsyncadd [#allocation5], 4294967280 }
  0x10   :  { %147 = dma.done.wait [#allocation3], 512  }
  0x11   :  { %148 = vsyncadd [#allocation3], 4294966784 }
  0x12   :  { %34 = sfence }
  0x13   :  { %s92_s0 = sld [smem:[#allocation2 + $0x2]]  ;;  %v39_v0 = vld [vmem:[#allocation6] sm:$0xff]  ;;  %v40_v1 = vld [vmem:[#allocation6 + $0x8] sm:$0xff]  ;;  %v41_v2 = vld [vmem:[#allocation6 + $0x10] sm:$0xff]  ;;  %s153_s1 = smov [#allocation7]  }
  0x14   :  { %s93_s17 = sld [smem:[#allocation2 + $0x3]]  ;;  %v42_v3 = vld [vmem:[#allocation6 + $0x18] sm:$0xff]  ;;  %s81_s20 = sshll.u32 %s153_s1, 4  ;;  %s82_s20 = int_to_ptr.vmem [resolvable:$true] %s81_s20 }
  0x15   :  { %s91_s18 = sld [smem:[#allocation2 + $0x1]]  ;;  %s125_s21 = scalar_lea.vmem %s82_s20, 512 }
  0x16   :  { %s35_s19 = sld [smem:[#allocation2]]  ;;  %p126_p5 = scmp.ne.s32.totalorder %s82_s20, %s125_s21 }
  0x17   :  { %p130_p6 = scmp.lt.s32.totalorder %s82_s20, %s82_s20  ;;  %p131_p7 = scmp.lt.s32.totalorder %s125_s21, %s125_s21 }
  0x19   :  { %v48_v5 = vstv %s92_s0  ;;  %p132_p8 = por %p131_p7, %p130_p6 }
  0x1a   :  { %v43_v4 = vstv %s93_s17 }
  0x1b   :  { %v44_v6 = vmul.f32 %v43_v4, %v39_v0  ;;  %v45_v7 = vmul.f32 %v43_v4, %v40_v1  ;;  %v46_v8 = vmul.f32 %v43_v4, %v41_v2  ;;  %v47_v9 = vmul.f32 %v43_v4, %v42_v3  ;;  %p133_p9 = pnand %p132_p8, %p126_p5 }
  0x1c   :  { %v57_v14 = vstv %s91_s18  ;;  %v66_v23 = vstv %s35_s19 }
  0x1d   :  { %v49_v10 = vadd.f32 %v48_v5, %v44_v6  ;;  %v50_v11 = vadd.f32 %v48_v5, %v45_v7  ;;  %v51_v12 = vadd.f32 %v48_v5, %v46_v8  ;;  %v52_v13 = vadd.f32 %v48_v5, %v47_v9 }
  0x1f   :  { %v53_v15 = vmul.f32 %v49_v10, %v39_v0  ;;  %v54_v16 = vmul.f32 %v50_v11, %v40_v1  ;;  %v55_v17 = vmul.f32 %v51_v12, %v41_v2  ;;  %v56_v18 = vmul.f32 %v52_v13, %v42_v3 }
  0x21   :  { %v58_v19 = vadd.f32 %v57_v14, %v53_v15  ;;  %v59_v20 = vadd.f32 %v57_v14, %v54_v16  ;;  %v60_v21 = vadd.f32 %v57_v14, %v55_v17  ;;  %v61_v22 = vadd.f32 %v57_v14, %v56_v18 }
  0x23   :  { %v62_v24 = vmul.f32 %v58_v19, %v39_v0  ;;  %v63_v25 = vmul.f32 %v59_v20, %v40_v1  ;;  %v64_v26 = vmul.f32 %v60_v21, %v41_v2  ;;  %v65_v27 = vmul.f32 %v61_v22, %v42_v3 }
  0x25   :  { %v67_v28 = vadd.f32 %v66_v23, %v62_v24  ;;  %v68_v29 = vadd.f32 %v66_v23, %v63_v25  ;;  %v69_v30 = vadd.f32 %v66_v23, %v64_v26  ;;  %v70_v31 = vadd.f32 %v66_v23, %v65_v27 }
  0x27   :  { %71 = vst [vmem:[#allocation7] sm:$0xff] %v67_v28  ;;  %72 = vst [vmem:[#allocation7 + $0x8] sm:$0xff] %v68_v29 }
  0x28   :  { %73 = vst [vmem:[#allocation7 + $0x10] sm:$0xff] %v69_v30  ;;  %74 = vst [vmem:[#allocation7 + $0x18] sm:$0xff] %v70_v31 }
  0x29   :  { %136 = shalt.err (!%p133_p9)
}
  0x2a   :  { %84 = dma.vmem_to_hbm [thread:$0]  %s82_s20, 512, %s180_s2, [#allocation4]  }
  0x2b   :  { %149 = dma.done.wait [#allocation4], 512  }
  0x2c   :  { %150 = vsyncadd [#allocation4], 4294966784 }
  0x2d   :  { %88 = vsyncpa [#allocation3], 1 }
  0x2e   :  { %89 = vsyncpa [#allocation4], 1 }
  0x2f   :  { %90 = vsyncpa [#allocation5], 1 }

</bundles_post_ra>
